<compile_context>
chip_gen: v6e
topology: v6e:2x2x1
jax: 0.10.0
libtpu: 0.0.40
codegen_flags: <defaults>
</compile_context>

<pallas_src>
import functools
import math

import jax
import jax.numpy as jnp
from jax import lax
from jax.experimental import pallas as pl
from jax.experimental.pallas import tpu as pltpu


def _moving_avg_kernel(x_ref, *refs, K, stride, L, L_out, front_pad, end, delta,
                       a, b, rem, t_chunk, use_two_level, emit_residual):
    if emit_residual:
        res_ref, mean_ref, xp_ref, ps_ref = refs
    else:
        mean_ref, xp_ref, ps_ref = refs
        res_ref = None

    c_blk = x_ref.shape[-1]
    inv_k = jnp.float32(1.0 / K)

    # ---- Replicate-pad the series into VMEM scratch (no padded copy in HBM). ---
    # Layout: xp_ref[:, delta + j, :] == padded_series[j], j in [0, L + front + end).
    # Every store below starts at an 8-aligned static sublane offset.
    if front_pad > 0:
        xp_ref[:, 0:front_pad, :] = jnp.broadcast_to(
            x_ref[:, 0:1, :], (1, front_pad, c_blk))
    if end > 0:
        e0 = ((front_pad + L) // 8) * 8          # aligned start, >= front_pad
        e_len = front_pad + L + end - e0
        xp_ref[:, e0:e0 + e_len, :] = jnp.broadcast_to(
            x_ref[:, L - 1:L, :], (1, e_len, c_blk))
    xp_ref[:, front_pad:front_pad + L, :] = x_ref[...]   # overwrites temp overlap

    if stride != 1:
        # Fallback path (the AnaNET decoder only uses stride == 1): direct K-term
        # sum over strided windows, whole output block at once.
        acc = xp_ref[:, pl.ds(delta, L_out, stride=stride), :].astype(jnp.float32)
        for k in range(1, K):
            acc = acc + xp_ref[:, pl.ds(delta + k, L_out, stride=stride),
                               :].astype(jnp.float32)
        mean_ref[...] = (acc * inv_k).astype(mean_ref.dtype)
        return

    # ---- stride == 1: process output rows in chunks to bound vreg pressure. ----
    def compute_chunk(t0, n_rows):
        base = t0 + delta
        if use_two_level:
            # level 1: sums of `a` consecutive rows (kept in vregs, parked in
            # VMEM); level 2: `b` shifted reads of the partials (+ remainder).
            l_s = n_rows + (b - 1) * a
            s = xp_ref[:, pl.ds(base, l_s), :].astype(jnp.float32)
            for i in range(1, a):
                s = s + xp_ref[:, pl.ds(base + i, l_s), :].astype(jnp.float32)
            ps_ref[:, 0:l_s, :] = s
            acc = ps_ref[:, 0:n_rows, :]
            for j in range(1, b):
                acc = acc + ps_ref[:, pl.ds(j * a, n_rows), :]
            for i in range(rem):
                acc = acc + xp_ref[:, pl.ds(base + a * b + i, n_rows),
                                   :].astype(jnp.float32)
        else:
            acc = xp_ref[:, pl.ds(base, n_rows), :].astype(jnp.float32)
            for k in range(1, K):
                acc = acc + xp_ref[:, pl.ds(base + k, n_rows), :].astype(jnp.float32)
        mean = acc * inv_k
        mean_ref[:, pl.ds(t0, n_rows), :] = mean.astype(mean_ref.dtype)
        if emit_residual:
            xin = x_ref[:, pl.ds(t0, n_rows), :].astype(jnp.float32)
            res_ref[:, pl.ds(t0, n_rows), :] = (xin - mean).astype(res_ref.dtype)

    n_full = L_out // t_chunk
    rem_rows = L_out - n_full * t_chunk

    if n_full > 0:
        def body(c, carry):
            t0 = c * t_chunk
            if t_chunk % 8 == 0:
                t0 = pl.multiple_of(t0, 8)
            compute_chunk(t0, t_chunk)
            return carry
        lax.fori_loop(0, n_full, body, 0)
    if rem_rows > 0:
        compute_chunk(n_full * t_chunk, rem_rows)


def _decompose_k(K, stride):
    """Two-level (a*b + rem) split of the K-term window sum, if profitable."""
    if stride != 1 or K < 2:
        return 1, 1, 0, False
    a = max(1, math.isqrt(K))
    b = K // a
    rem = K - a * b
    use = (a + b + rem + 1) < K
    if not use:
        return 1, 1, 0, False
    return a, b, rem, True


def _moving_avg_impl(x, kernel_size, stride, emit_residual):
    B, L, C = x.shape
    K = int(kernel_size)
    stride = int(stride)
    assert K >= 1 and stride >= 1
    if emit_residual and stride != 1:
        raise ValueError("residual output requires stride == 1")

    end = (K - 1) // 2
    front = K - 1 - end
    L_pad = L + front + end
    L_out = (L_pad - K) // stride + 1

    # Aligned scratch layout for the in-kernel replicate padding.
    front_pad = ((front + 7) // 8) * 8 if front > 0 else 0
    delta = front_pad - front
    xp_rows = front_pad + L + end

    # Channel tiling: lane-dense 128-lane chunks when possible, else full C
    # (padding channels to 128 would multiply HBM traffic on this mem-bound op).
    C_BLK = 128 if C % 128 == 0 else C
    n_c = C // C_BLK
    lane_groups = -(-C_BLK // 128)

    a, b, rem, use_two_level = _decompose_k(K, stride)
    halo = (b - 1) * a if use_two_level else 0
    row_budget = max(8, (192 // lane_groups) // 8 * 8)   # rows per live vreg slab
    if use_two_level and row_budget - halo < 8:
        a, b, rem, use_two_level, halo = 1, 1, 0, False, 0
    t_chunk = int(max(1, min(L_out, 64, row_budget - halo)))
    ps_rows = (t_chunk + halo) if use_two_level else 8

    kernel = functools.partial(
        _moving_avg_kernel, K=K, stride=stride, L=L, L_out=L_out,
        front_pad=front_pad, end=end, delta=delta, a=a, b=b, rem=rem,
        t_chunk=t_chunk, use_two_level=use_two_level,
        emit_residual=emit_residual)

    idx_map = lambda bi, ci: (bi, 0, ci)
    mean_sds = jax.ShapeDtypeStruct((B, L_out, C), x.dtype)
    mean_spec = pl.BlockSpec((1, L_out, C_BLK), idx_map)
    if emit_residual:
        out_shape = (jax.ShapeDtypeStruct((B, L, C), x.dtype), mean_sds)
        out_specs = [pl.BlockSpec((1, L, C_BLK), idx_map), mean_spec]
        n_out = 2
    else:
        out_shape = mean_sds
        out_specs = mean_spec
        n_out = 1

    # Rough padded VMEM footprint -> raise the scoped limit only when needed.
    def rup(v, m):
        return (v + m - 1) // m * m
    lane_b = lane_groups * 128
    itm = jnp.dtype(x.dtype).itemsize
    vmem_est = ((2 * rup(L, 8) + 2 * n_out * rup(L_out, 8) + rup(xp_rows, 8))
                * lane_b * itm + rup(ps_rows, 8) * lane_b * 4 + (2 << 20))
    compiler_kwargs = dict(dimension_semantics=("parallel", "parallel"))
    if vmem_est > (32 << 20):
        compiler_kwargs["vmem_limit_bytes"] = int(min(vmem_est, 100 << 20))

    return pl.pallas_call(
        kernel,
        out_shape=out_shape,
        grid_spec=pltpu.PrefetchScalarGridSpec(
            num_scalar_prefetch=0,
            grid=(B, n_c),
            in_specs=[pl.BlockSpec((1, L, C_BLK), idx_map)],
            out_specs=out_specs,
            scratch_shapes=[
                pltpu.VMEM((1, xp_rows, C_BLK), x.dtype),    # padded series
                pltpu.VMEM((1, ps_rows, C_BLK), jnp.float32),  # level-1 partials
            ],
        ),
        compiler_params=pltpu.CompilerParams(**compiler_kwargs),
    )(x)


def moving_avg(x, kernel_size, stride=1):
    """x: (B, L, C) -> (B, L_out, C); matches the PyTorch moving_avg module."""
    return _moving_avg_impl(x, kernel_size, stride, emit_residual=False)


def series_decomp(x, kernel_size):
    """x: (B, L, C) -> (res, moving_mean); matches the PyTorch series_decomp."""
    return _moving_avg_impl(x, kernel_size, 1, emit_residual=True)


# ------------------------- pure-JAX references -------------------------------
def _moving_avg_ref(x, kernel_size, stride):
    end = (kernel_size - 1) // 2
    front = kernel_size - 1 - end
    x_pad = jnp.concatenate(
        [jnp.repeat(x[:, :1, :], front, axis=1), x,
         jnp.repeat(x[:, -1:, :], end, axis=1)], axis=1)
    L_pad = x_pad.shape[1]
    L_out = (L_pad - kernel_size) // stride + 1
    windows = jnp.stack(
        [x_pad[:, k:k + stride * L_out:stride, :] for k in range(kernel_size)],
        axis=0)
    return jnp.mean(windows, axis=0)


if __name__ == "__main__":
    key = jax.random.PRNGKey(0)
    k1, k2, k3 = jax.random.split(key, 3)

    # 1) DecoderLayer.decomp1 configuration: series_decomp(size=24), stride=1
    #    (exercises the fused residual, two-level sum, chunk loop + epilogue).
    x1 = jax.random.normal(k1, (2, 80, 32), dtype=jnp.float32)
    res, mean = jax.block_until_ready(series_decomp(x1, 24))
    mean_ref = _moving_avg_ref(x1, 24, 1)
    assert mean.shape == mean_ref.shape, (mean.shape, mean_ref.shape)
    assert jnp.max(jnp.abs(mean - mean_ref)) < 2e-5
    assert jnp.max(jnp.abs(res - (x1 - mean_ref))) < 2e-5

    # 2) moving_avg, small kernel, lane-dense channel-tiled grid (C=1024 -> 8 tiles).
    x2 = jax.random.normal(k2, (1, 40, 1024), dtype=jnp.float32)
    out2 = jax.block_until_ready(moving_avg(x2, 3, 1))
    ref2 = _moving_avg_ref(x2, 3, 1)
    assert out2.shape == ref2.shape, (out2.shape, ref2.shape)
    assert jnp.max(jnp.abs(out2 - ref2)) < 2e-5

    # 3) stride > 1 fallback path (not used by DecoderLayer, kept for parity).
    x3 = jax.random.normal(k3, (2, 17, 32), dtype=jnp.float32)
    out3 = jax.block_until_ready(moving_avg(x3, 5, 2))
    ref3 = _moving_avg_ref(x3, 5, 2)
    assert out3.shape == ref3.shape, (out3.shape, ref3.shape)
    assert jnp.max(jnp.abs(out3 - ref3)) < 2e-5

    print("KERNEL_OK")
</pallas_src>

<mosaic_0001>
module attributes {stable_mosaic.version = 11 : i64} {
  func.func @_moving_avg_kernel(%arg0: i32, %arg1: i32, %arg2: memref<1x80x32xf32, #tpu.memory_space<vmem>>, %arg3: memref<1x80x32xf32, #tpu.memory_space<vmem>>, %arg4: memref<1x80x32xf32, #tpu.memory_space<vmem>>, %arg5: memref<1x107x32xf32, #tpu.memory_space<vmem>>, %arg6: memref<1x84x32xf32, #tpu.memory_space<vmem>>) attributes {dimension_semantics = [#tpu.dimension_semantics<parallel>, #tpu.dimension_semantics<parallel>], iteration_bounds = array<i64: 2, 1>, scalar_prefetch = 0 : i64, scratch_operands = 2 : i64, tpu.core_type = #tpu.core_type<tc>, window_params = [{transform_indices = @transform_0, window_bounds = array<i64: 1, 80, 32>}, {transform_indices = @transform_1, window_bounds = array<i64: 1, 80, 32>}, {transform_indices = @transform_2, window_bounds = array<i64: 1, 80, 32>}]} {
    %c0 = arith.constant 0 : index
    %c0_0 = arith.constant 0 : index
    %c0_1 = arith.constant 0 : index
    %0 = vector.load %arg2[%c0, %c0_0, %c0_1] : memref<1x80x32xf32, #tpu.memory_space<vmem>>, vector<1x1x32xf32>
    %1 = vector.shape_cast %0 : vector<1x1x32xf32> to vector<1x1x32xf32>
    %2 = vector.broadcast %1 : vector<1x1x32xf32> to vector<1x16x32xf32>
    %c0_2 = arith.constant 0 : index
    %c0_3 = arith.constant 0 : index
    %c0_4 = arith.constant 0 : index
    %3 = vector.load %arg5[%c0_2, %c0_3, %c0_4] : memref<1x107x32xf32, #tpu.memory_space<vmem>>, vector<1x16x32xf32>
    tpu.vector_store %arg5[%c0_2, %c0_3, %c0_4], %2 {strides = array<i32>} : memref<1x107x32xf32, #tpu.memory_space<vmem>>, vector<1x16x32xf32>,
    %c0_5 = arith.constant 0 : index
    %c79 = arith.constant 79 : index
    %c0_6 = arith.constant 0 : index
    %4 = vector.load %arg2[%c0_5, %c79, %c0_6] : memref<1x80x32xf32, #tpu.memory_space<vmem>>, vector<1x1x32xf32>
    %5 = vector.shape_cast %4 : vector<1x1x32xf32> to vector<1x1x32xf32>
    %6 = vector.broadcast %5 : vector<1x1x32xf32> to vector<1x11x32xf32>
    %c0_7 = arith.constant 0 : index
    %c96 = arith.constant 96 : index
    %c0_8 = arith.constant 0 : index
    %7 = vector.load %arg5[%c0_7, %c96, %c0_8] : memref<1x107x32xf32, #tpu.memory_space<vmem>>, vector<1x11x32xf32>
    tpu.vector_store %arg5[%c0_7, %c96, %c0_8], %6 {strides = array<i32>} : memref<1x107x32xf32, #tpu.memory_space<vmem>>, vector<1x11x32xf32>,
    %c0_9 = arith.constant 0 : index
    %c0_10 = arith.constant 0 : index
    %c0_11 = arith.constant 0 : index
    %8 = vector.load %arg2[%c0_9, %c0_10, %c0_11] : memref<1x80x32xf32, #tpu.memory_space<vmem>>, vector<1x80x32xf32>
    %c0_12 = arith.constant 0 : index
    %c16 = arith.constant 16 : index
    %c0_13 = arith.constant 0 : index
    %9 = vector.load %arg5[%c0_12, %c16, %c0_13] : memref<1x107x32xf32, #tpu.memory_space<vmem>>, vector<1x80x32xf32>
    tpu.vector_store %arg5[%c0_12, %c16, %c0_13], %8 {strides = array<i32>} : memref<1x107x32xf32, #tpu.memory_space<vmem>>, vector<1x80x32xf32>,
    %cst = arith.constant 0.0416666679 : f32
    %c0_i32 = arith.constant 0 : i32
    %c64_i32 = arith.constant 64 : i32
    %10 = arith.muli %c0_i32, %c64_i32 : i32
    %11 = tpu.assume_multiple %10, 8 : i32
    %c4_i32 = arith.constant 4 : i32
    %12 = arith.addi %11, %c4_i32 : i32
    %c0_14 = arith.constant 0 : index
    %13 = arith.index_cast %12 : i32 to index
    %c0_15 = arith.constant 0 : index
    %14 = vector.load %arg5[%c0_14, %13, %c0_15] : memref<1x107x32xf32, #tpu.memory_space<vmem>>, vector<1x84x32xf32>
    %c1_i32 = arith.constant 1 : i32
    %15 = arith.addi %12, %c1_i32 : i32
    %c0_16 = arith.constant 0 : index
    %16 = arith.index_cast %15 : i32 to index
    %c0_17 = arith.constant 0 : index
    %17 = vector.load %arg5[%c0_16, %16, %c0_17] : memref<1x107x32xf32, #tpu.memory_space<vmem>>, vector<1x84x32xf32>
    %18 = arith.addf %14, %17 : vector<1x84x32xf32>
    %c2_i32 = arith.constant 2 : i32
    %19 = arith.addi %12, %c2_i32 : i32
    %c0_18 = arith.constant 0 : index
    %20 = arith.index_cast %19 : i32 to index
    %c0_19 = arith.constant 0 : index
    %21 = vector.load %arg5[%c0_18, %20, %c0_19] : memref<1x107x32xf32, #tpu.memory_space<vmem>>, vector<1x84x32xf32>
    %22 = arith.addf %18, %21 : vector<1x84x32xf32>
    %c3_i32 = arith.constant 3 : i32
    %23 = arith.addi %12, %c3_i32 : i32
    %c0_20 = arith.constant 0 : index
    %24 = arith.index_cast %23 : i32 to index
    %c0_21 = arith.constant 0 : index
    %25 = vector.load %arg5[%c0_20, %24, %c0_21] : memref<1x107x32xf32, #tpu.memory_space<vmem>>, vector<1x84x32xf32>
    %26 = arith.addf %22, %25 : vector<1x84x32xf32>
    %c0_22 = arith.constant 0 : index
    %c0_23 = arith.constant 0 : index
    %c0_24 = arith.constant 0 : index
    %27 = vector.load %arg6[%c0_22, %c0_23, %c0_24] : memref<1x84x32xf32, #tpu.memory_space<vmem>>, vector<1x84x32xf32>
    tpu.vector_store %arg6[%c0_22, %c0_23, %c0_24], %26 {strides = array<i32>} : memref<1x84x32xf32, #tpu.memory_space<vmem>>, vector<1x84x32xf32>,
    %c0_25 = arith.constant 0 : index
    %c0_26 = arith.constant 0 : index
    %c0_27 = arith.constant 0 : index
    %28 = vector.load %arg6[%c0_25, %c0_26, %c0_27] : memref<1x84x32xf32, #tpu.memory_space<vmem>>, vector<1x64x32xf32>
    %c0_28 = arith.constant 0 : index
    %c4 = arith.constant 4 : index
    %c0_29 = arith.constant 0 : index
    %29 = vector.load %arg6[%c0_28, %c4, %c0_29] : memref<1x84x32xf32, #tpu.memory_space<vmem>>, vector<1x64x32xf32>
    %30 = arith.addf %28, %29 : vector<1x64x32xf32>
    %c0_30 = arith.constant 0 : index
    %c8 = arith.constant 8 : index
    %c0_31 = arith.constant 0 : index
    %31 = vector.load %arg6[%c0_30, %c8, %c0_31] : memref<1x84x32xf32, #tpu.memory_space<vmem>>, vector<1x64x32xf32>
    %32 = arith.addf %30, %31 : vector<1x64x32xf32>
    %c0_32 = arith.constant 0 : index
    %c12 = arith.constant 12 : index
    %c0_33 = arith.constant 0 : index
    %33 = vector.load %arg6[%c0_32, %c12, %c0_33] : memref<1x84x32xf32, #tpu.memory_space<vmem>>, vector<1x64x32xf32>
    %34 = arith.addf %32, %33 : vector<1x64x32xf32>
    %c0_34 = arith.constant 0 : index
    %c16_35 = arith.constant 16 : index
    %c0_36 = arith.constant 0 : index
    %35 = vector.load %arg6[%c0_34, %c16_35, %c0_36] : memref<1x84x32xf32, #tpu.memory_space<vmem>>, vector<1x64x32xf32>
    %36 = arith.addf %34, %35 : vector<1x64x32xf32>
    %c0_37 = arith.constant 0 : index
    %c20 = arith.constant 20 : index
    %c0_38 = arith.constant 0 : index
    %37 = vector.load %arg6[%c0_37, %c20, %c0_38] : memref<1x84x32xf32, #tpu.memory_space<vmem>>, vector<1x64x32xf32>
    %38 = arith.addf %36, %37 : vector<1x64x32xf32>
    %39 = vector.broadcast %cst : f32 to vector<1x64x32xf32>
    %40 = arith.mulf %38, %39 : vector<1x64x32xf32>
    %c0_39 = arith.constant 0 : index
    %41 = arith.index_cast %11 : i32 to index
    %c0_40 = arith.constant 0 : index
    %42 = vector.load %arg4[%c0_39, %41, %c0_40] : memref<1x80x32xf32, #tpu.memory_space<vmem>>, vector<1x64x32xf32>
    tpu.vector_store %arg4[%c0_39, %41, %c0_40], %40 {strides = array<i32>} : memref<1x80x32xf32, #tpu.memory_space<vmem>>, vector<1x64x32xf32>,
    %c0_41 = arith.constant 0 : index
    %43 = arith.index_cast %11 : i32 to index
    %c0_42 = arith.constant 0 : index
    %44 = vector.load %arg2[%c0_41, %43, %c0_42] : memref<1x80x32xf32, #tpu.memory_space<vmem>>, vector<1x64x32xf32>
    %45 = arith.subf %44, %40 : vector<1x64x32xf32>
    %c0_43 = arith.constant 0 : index
    %46 = arith.index_cast %11 : i32 to index
    %c0_44 = arith.constant 0 : index
    %47 = vector.load %arg3[%c0_43, %46, %c0_44] : memref<1x80x32xf32, #tpu.memory_space<vmem>>, vector<1x64x32xf32>
    tpu.vector_store %arg3[%c0_43, %46, %c0_44], %45 {strides = array<i32>} : memref<1x80x32xf32, #tpu.memory_space<vmem>>, vector<1x64x32xf32>,
    %c1_i32_45 = arith.constant 1 : i32
    %c0_46 = arith.constant 0 : index
    %c68 = arith.constant 68 : index
    %c0_47 = arith.constant 0 : index
    %48 = vector.load %arg5[%c0_46, %c68, %c0_47] : memref<1x107x32xf32, #tpu.memory_space<vmem>>, vector<1x36x32xf32>
    %c0_48 = arith.constant 0 : index
    %c69 = arith.constant 69 : index
    %c0_49 = arith.constant 0 : index
    %49 = vector.load %arg5[%c0_48, %c69, %c0_49] : memref<1x107x32xf32, #tpu.memory_space<vmem>>, vector<1x36x32xf32>
    %50 = arith.addf %48, %49 : vector<1x36x32xf32>
    %c0_50 = arith.constant 0 : index
    %c70 = arith.constant 70 : index
    %c0_51 = arith.constant 0 : index
    %51 = vector.load %arg5[%c0_50, %c70, %c0_51] : memref<1x107x32xf32, #tpu.memory_space<vmem>>, vector<1x36x32xf32>
    %52 = arith.addf %50, %51 : vector<1x36x32xf32>
    %c0_52 = arith.constant 0 : index
    %c71 = arith.constant 71 : index
    %c0_53 = arith.constant 0 : index
    %53 = vector.load %arg5[%c0_52, %c71, %c0_53] : memref<1x107x32xf32, #tpu.memory_space<vmem>>, vector<1x36x32xf32>
    %54 = arith.addf %52, %53 : vector<1x36x32xf32>
    %c0_54 = arith.constant 0 : index
    %c0_55 = arith.constant 0 : index
    %c0_56 = arith.constant 0 : index
    %55 = vector.load %arg6[%c0_54, %c0_55, %c0_56] : memref<1x84x32xf32, #tpu.memory_space<vmem>>, vector<1x36x32xf32>
    tpu.vector_store %arg6[%c0_54, %c0_55, %c0_56], %54 {strides = array<i32>} : memref<1x84x32xf32, #tpu.memory_space<vmem>>, vector<1x36x32xf32>,
    %c0_57 = arith.constant 0 : index
    %c0_58 = arith.constant 0 : index
    %c0_59 = arith.constant 0 : index
    %56 = vector.load %arg6[%c0_57, %c0_58, %c0_59] : memref<1x84x32xf32, #tpu.memory_space<vmem>>, vector<1x16x32xf32>
    %c0_60 = arith.constant 0 : index
    %c4_61 = arith.constant 4 : index
    %c0_62 = arith.constant 0 : index
    %57 = vector.load %arg6[%c0_60, %c4_61, %c0_62] : memref<1x84x32xf32, #tpu.memory_space<vmem>>, vector<1x16x32xf32>
    %58 = arith.addf %56, %57 : vector<1x16x32xf32>
    %c0_63 = arith.constant 0 : index
    %c8_64 = arith.constant 8 : index
    %c0_65 = arith.constant 0 : index
    %59 = vector.load %arg6[%c0_63, %c8_64, %c0_65] : memref<1x84x32xf32, #tpu.memory_space<vmem>>, vector<1x16x32xf32>
    %60 = arith.addf %58, %59 : vector<1x16x32xf32>
    %c0_66 = arith.constant 0 : index
    %c12_67 = arith.constant 12 : index
    %c0_68 = arith.constant 0 : index
    %61 = vector.load %arg6[%c0_66, %c12_67, %c0_68] : memref<1x84x32xf32, #tpu.memory_space<vmem>>, vector<1x16x32xf32>
    %62 = arith.addf %60, %61 : vector<1x16x32xf32>
    %c0_69 = arith.constant 0 : index
    %c16_70 = arith.constant 16 : index
    %c0_71 = arith.constant 0 : index
    %63 = vector.load %arg6[%c0_69, %c16_70, %c0_71] : memref<1x84x32xf32, #tpu.memory_space<vmem>>, vector<1x16x32xf32>
    %64 = arith.addf %62, %63 : vector<1x16x32xf32>
    %c0_72 = arith.constant 0 : index
    %c20_73 = arith.constant 20 : index
    %c0_74 = arith.constant 0 : index
    %65 = vector.load %arg6[%c0_72, %c20_73, %c0_74] : memref<1x84x32xf32, #tpu.memory_space<vmem>>, vector<1x16x32xf32>
    %66 = arith.addf %64, %65 : vector<1x16x32xf32>
    %cst_75 = arith.constant 0.0416666679 : f32
    %67 = vector.broadcast %cst_75 : f32 to vector<1x16x32xf32>
    %68 = arith.mulf %66, %67 : vector<1x16x32xf32>
    %c0_76 = arith.constant 0 : index
    %c64 = arith.constant 64 : index
    %c0_77 = arith.constant 0 : index
    %69 = vector.load %arg4[%c0_76, %c64, %c0_77] : memref<1x80x32xf32, #tpu.memory_space<vmem>>, vector<1x16x32xf32>
    tpu.vector_store %arg4[%c0_76, %c64, %c0_77], %68 {strides = array<i32>} : memref<1x80x32xf32, #tpu.memory_space<vmem>>, vector<1x16x32xf32>,
    %c0_78 = arith.constant 0 : index
    %c64_79 = arith.constant 64 : index
    %c0_80 = arith.constant 0 : index
    %70 = vector.load %arg2[%c0_78, %c64_79, %c0_80] : memref<1x80x32xf32, #tpu.memory_space<vmem>>, vector<1x16x32xf32>
    %71 = arith.subf %70, %68 : vector<1x16x32xf32>
    %c0_81 = arith.constant 0 : index
    %c64_82 = arith.constant 64 : index
    %c0_83 = arith.constant 0 : index
    %72 = vector.load %arg3[%c0_81, %c64_82, %c0_83] : memref<1x80x32xf32, #tpu.memory_space<vmem>>, vector<1x16x32xf32>
    tpu.vector_store %arg3[%c0_81, %c64_82, %c0_83], %71 {strides = array<i32>} : memref<1x80x32xf32, #tpu.memory_space<vmem>>, vector<1x16x32xf32>,
    return
  }
  func.func @transform_0(%arg0: i32, %arg1: i32) -> (i32, i32, i32) {
    %c0_i32 = arith.constant 0 : i32
    %c0_i32_0 = arith.constant 0 : i32
    return %arg0, %c0_i32, %arg1 : i32, i32, i32
  }
  func.func @transform_1(%arg0: i32, %arg1: i32) -> (i32, i32, i32) {
    %c0_i32 = arith.constant 0 : i32
    %c0_i32_0 = arith.constant 0 : i32
    return %arg0, %c0_i32, %arg1 : i32, i32, i32
  }
  func.func @transform_2(%arg0: i32, %arg1: i32) -> (i32, i32, i32) {
    %c0_i32 = arith.constant 0 : i32
    %c0_i32_0 = arith.constant 0 : i32
    return %arg0, %c0_i32, %arg1 : i32, i32, i32
  }
}

</mosaic_0001>

<bundles_post_ra>
// kernel: tpu_custom_call.1
= control target key start
LH: loop header
LB: loop body
LE: loop exit
PB: predicated region body
PF: predicated region fallthrough
CT: control target
= control target key end

     0   :  { %s707_s9 = smov 0   ;;  %s709_s10 = smov 0   ;;  %s862_s0 = inlined_call_operand.vmem [shape: f32[2,80,32], index: 0, kind: input, shape index: {}]   ;;  %s863_s1 = inlined_call_operand.vmem [shape: f32[2,80,32], index: 1, kind: output, shape index: {0}]   ;;  %s864_s2 = inlined_call_operand.vmem [shape: f32[2,80,32], index: 2, kind: output, shape index: {1}]  }
   0x1   :  { %s711_s11 = smov 0  }
   0x2 LB: > { %s25_s12 = sadd.s32 1, %s686_s10  ;;  %p635_p0 = scmp.ge.s32.totalorder %s690_s11, 1  ;;  %s690_s11 = sphi %s711_s11, %s13_s11   ;;  %s686_s10 = sphi %s709_s10, %s866_s10   ;;  %s682_s9 = sphi %s707_s9, %s865_s9  }
   0x3   : > { %p27_p1 = scmp.ge.s32.totalorder %s25_s12, 2  ;;  %p136_p2 = scmp.lt.s32.totalorder %s690_s11, 3 }
   0x5   : > { %s868_s12 = smov (%p27_p1, %s25_s12), 0  ;;  %p137_p3 = pnand %p635_p0, %p136_p2 }
   0x6   : > { %p172_p4 = scmp.lt.s32.totalorder (!%p137_p3), %s682_s9, 1 }
   0x7   : > { %140 = sbr.rel (%p137_p3) target bundleno = 74 (0x4a), region = 24 }
   0xc   : > { %s870_s9 = smov (!%p172_p4, %s682_s9), 1  ;;  %vm201_vm0 = vcmask 261120   ;;  %vm210_vm1 = vcmask 256000   ;;  %vm327_vm2 = vcmask 257024  }
   0xd   : > { %s725_s13 = smul.u32 80, %s870_s9 }
   0xf   : > { %s179_s16 = scalar_lea.vmem %s862_s0, %s725_s13  ;;  %s794_s19 = scalar_lea.vmem %s864_s2, %s725_s13 }
  0x10   : > { %v639_v0 = vld [vmem:[%s179_s16] ss:$0 sm:$0xff]  ;;  %v733_v2 = vld [vmem:[%s179_s16 + $0x8] sm:$0xff]  ;;  %v741_v3 = vld [vmem:[%s179_s16 + $0x10] sm:$0xff]  ;;  %s801_s22 = scalar_lea.vmem %s863_s1, %s725_s13 }
  0x11   : > { %v731_v1 = vld [vmem:[%s179_s16] sm:$0xff]  ;;  %202 = vst.msk [vmem:[#allocation2] sm:$0xff] %vm201_vm0, %v639_v0  ;;  %203 = vst.msk [vmem:[#allocation2 + $0x8] sm:$0xff] %vm201_vm0, %v639_v0  ;;  %v743_v4 = vld [vmem:[%s179_s16 + $0x18] sm:$0xff] }
  0x12   : > { %222 = vst.msk [vmem:[#allocation2 + $0x10] sm:$0xff] %vm201_vm0, %v731_v1  ;;  %223 = vst.msk [vmem:[#allocation2 + $0x18] sm:$0xff] %vm201_vm0, %v733_v2  ;;  %v745_v5 = vld [vmem:[%s179_s16 + $0x20] sm:$0xff]  ;;  %v753_v6 = vld [vmem:[%s179_s16 + $0x28] sm:$0xff] }
  0x13   : > { %224 = vst.msk [vmem:[#allocation2 + $0x20] sm:$0xff] %vm201_vm0, %v741_v3  ;;  %225 = vst.msk [vmem:[#allocation2 + $0x28] sm:$0xff] %vm201_vm0, %v743_v4  ;;  %v755_v7 = vld [vmem:[%s179_s16 + $0x30] sm:$0xff]  ;;  %v757_v8 = vld [vmem:[%s179_s16 + $0x38] sm:$0xff] }
  0x14   : > { %226 = vst.msk [vmem:[#allocation2 + $0x30] sm:$0xff] %vm201_vm0, %v745_v5  ;;  %227 = vst.msk [vmem:[#allocation2 + $0x38] sm:$0xff] %vm201_vm0, %v753_v6  ;;  %v640_v9 = vld [vmem:[%s179_s16 + $0x4f] ss:$0 sm:$0xff]  ;;  %v765_v10 = vld [vmem:[%s179_s16 + $0x40] sm:$0xff] }
  0x15   : > { %228 = vst.msk [vmem:[#allocation2 + $0x40] sm:$0xff] %vm201_vm0, %v755_v7  ;;  %229 = vst.msk [vmem:[#allocation2 + $0x48] sm:$0xff] %vm201_vm0, %v757_v8  ;;  %v767_v11 = vld [vmem:[%s179_s16 + $0x48] sm:$0xff] }
  0x16   : > { %209 = vst.msk [vmem:[#allocation2 + $0x60] sm:$0xff] %vm201_vm0, %v640_v9  ;;  %230 = vst.msk [vmem:[#allocation2 + $0x50] sm:$0xff] %vm201_vm0, %v765_v10 }
  0x17   : > { %231 = vst.msk [vmem:[#allocation2 + $0x58] sm:$0xff] %vm201_vm0, %v767_v11 }
  0x18   : > { %211 = vst.msk [vmem:[#allocation2 + $0x68] sm:$0x7] %vm210_vm1, %v640_v9  ;;  %v234_v12 = vld [vmem:[#allocation2 + $0x4] sm:$0xff] }
  0x19   : > { %v247_v13 = vld [vmem:[#allocation2 + $0x5] sm:$0xff]  ;;  %v248_v16 = vld [vmem:[#allocation2 + $0xd] sm:$0xff]  ;;  %v249_v24 = vld [vmem:[#allocation2 + $0x15] sm:$0xff] }
  0x1a   : > { %v258_v14 = vadd.f32 %v247_v13, %v234_v12  ;;  %v235_v15 = vld [vmem:[#allocation2 + $0xc] sm:$0xff]  ;;  %v236_v20 = vld [vmem:[#allocation2 + $0x14] sm:$0xff]  ;;  %v237_v28 = vld [vmem:[#allocation2 + $0x1c] sm:$0xff] }
  0x1b   : > { %v271_v17 = vld [vmem:[#allocation2 + $0x6] sm:$0xff]  ;;  %v259_v19 = vadd.f32 %v248_v16, %v235_v15  ;;  %v272_v22 = vld [vmem:[#allocation2 + $0xe] sm:$0xff]  ;;  %v260_v26 = vadd.f32 %v249_v24, %v236_v20  ;;  %v273_v27 = vld [vmem:[#allocation2 + $0x16] sm:$0xff] }
  0x1c   : > { %v295_v18 = vld [vmem:[#allocation2 + $0x7] sm:$0xff]  ;;  %v282_v21 = vadd.f32 %v271_v17, %v258_v14  ;;  %v296_v23 = vld [vmem:[#allocation2 + $0xf] sm:$0xff]  ;;  %v250_v29 = vld [vmem:[#allocation2 + $0x1d] sm:$0xff] }
  0x1d   : > { %v283_v25 = vadd.f32 %v272_v22, %v259_v19  ;;  %v297_v31 = vld [vmem:[#allocation2 + $0x17] sm:$0xff]  ;;  %v261_v32 = vadd.f32 %v250_v29, %v237_v28  ;;  %v238_v34 = vld [vmem:[#allocation2 + $0x24] sm:$0xff]  ;;  %v284_v37 = vadd.f32 %v273_v27, %v260_v26  ;;  %v239_v41 = vld [vmem:[#allocation2 + $0x2c] sm:$0xff] }
  0x1e   : > { %v306_v30 = vadd.f32 %v295_v18, %v282_v21  ;;  %v274_v33 = vld [vmem:[#allocation2 + $0x1e] sm:$0xff]  ;;  %v275_v40 = vld [vmem:[#allocation2 + $0x26] sm:$0xff]  ;;  %v276_v45 = vld [vmem:[#allocation2 + $0x2e] sm:$0xff] }
  0x1f   : > { %v251_v35 = vld [vmem:[#allocation2 + $0x25] sm:$0xff]  ;;  %v307_v36 = vadd.f32 %v296_v23, %v283_v25  ;;  %v285_v42 = vadd.f32 %v274_v33, %v261_v32  ;;  %v252_v44 = vld [vmem:[#allocation2 + $0x2d] sm:$0xff]  ;;  %v308_v47 = vadd.f32 %v297_v31, %v284_v37  ;;  %v253_v51 = vld [vmem:[#allocation2 + $0x35] sm:$0xff] }
  0x20   : > { %v298_v38 = vld [vmem:[#allocation2 + $0x1f] sm:$0xff]  ;;  %v262_v39 = vadd.f32 %v251_v35, %v238_v34  ;;  %317 = vst.msk [vmem:[#allocation3] sm:$0xff] %vm201_vm0, %v306_v30  ;;  %v299_v43 = vld [vmem:[#allocation2 + $0x27] sm:$0xff]  ;;  %v300_v46 = vld [vmem:[#allocation2 + $0x2f] sm:$0xff]  ;;  %v263_v49 = vadd.f32 %v252_v44, %v239_v41 }
  0x21   : > { %318 = vst.msk [vmem:[#allocation3 + $0x8] sm:$0xff] %vm201_vm0, %v307_v36  ;;  %v240_v50 = vld [vmem:[#allocation2 + $0x34] sm:$0xff]  ;;  %v309_v53 = vadd.f32 %v298_v38, %v285_v42  ;;  %v241_v56 = vld [vmem:[#allocation2 + $0x3c] sm:$0xff]  ;;  %319 = vst.msk [vmem:[#allocation3 + $0x10] sm:$0xff] %vm201_vm0, %v308_v47 }
  0x22   : > { %v286_v48 = vadd.f32 %v275_v40, %v262_v39  ;;  %v277_v52 = vld [vmem:[#allocation2 + $0x36] sm:$0xff]  ;;  %v264_v54 = vadd.f32 %v253_v51, %v240_v50  ;;  %v287_v59 = vadd.f32 %v276_v45, %v263_v49  ;;  %v278_v61 = vld [vmem:[#allocation2 + $0x3e] sm:$0xff]  ;;  %v279_v12 = vld [vmem:[#allocation2 + $0x46] sm:$0xff] }
  0x23   : > { %v301_v55 = vld [vmem:[#allocation2 + $0x37] sm:$0xff]  ;;  %v302_v62 = vld [vmem:[#allocation2 + $0x3f] sm:$0xff]  ;;  %320 = vst.msk [vmem:[#allocation3 + $0x18] sm:$0xff] %vm201_vm0, %v309_v53  ;;  %v303_v13 = vld [vmem:[#allocation2 + $0x47] sm:$0xff] }
  0x24   : > { %v254_v57 = vld [vmem:[#allocation2 + $0x3d] sm:$0xff]  ;;  %v310_v58 = vadd.f32 %v299_v43, %v286_v48  ;;  %v288_v0 = vadd.f32 %v277_v52, %v264_v54  ;;  %v255_v9 = vld [vmem:[#allocation2 + $0x45] sm:$0xff]  ;;  %v311_v14 = vadd.f32 %v300_v46, %v287_v59  ;;  %v256_v18 = vld [vmem:[#allocation2 + $0x4d] sm:$0xff] }
  0x25   : > { %v265_v60 = vadd.f32 %v254_v57, %v241_v56  ;;  %v242_v63 = vld [vmem:[#allocation2 + $0x44] sm:$0xff]  ;;  %v243_v17 = vld [vmem:[#allocation2 + $0x4c] sm:$0xff]  ;;  %v244_v23 = vld [vmem:[#allocation2 + $0x54] sm:$0xf] }
  0x26   : > { %321 = vst.msk [vmem:[#allocation3 + $0x20] sm:$0xff] %vm201_vm0, %v310_v58  ;;  %v266_v16 = vadd.f32 %v255_v9, %v242_v63  ;;  %v280_v19 = vld [vmem:[#allocation2 + $0x4e] sm:$0xff]  ;;  %v312_v20 = vadd.f32 %v301_v55, %v288_v0  ;;  %v267_v21 = vadd.f32 %v256_v18, %v243_v17  ;;  %322 = vst.msk [vmem:[#allocation3 + $0x28] sm:$0xff] %vm201_vm0, %v311_v14  ;;  %v281_v28 = vld [vmem:[#allocation2 + $0x56] sm:$0xf] }
  0x27   : > { %v289_v15 = vadd.f32 %v278_v61, %v265_v60  ;;  %v304_v22 = vld [vmem:[#allocation2 + $0x4f] sm:$0xff]  ;;  %v305_v29 = vld [vmem:[#allocation2 + $0x57] sm:$0xf]  ;;  %v432_v45 = vld [vmem:[#allocation2 + $0x5c] sm:$0xff] }
  0x28   : > { %v257_v24 = vld [vmem:[#allocation2 + $0x55] sm:$0xf]  ;;  %v290_v26 = vadd.f32 %v279_v12, %v266_v16  ;;  %323 = vst.msk [vmem:[#allocation3 + $0x30] sm:$0xff] %vm201_vm0, %v312_v20  ;;  %v291_v31 = vadd.f32 %v280_v19, %v267_v21  ;;  %v338_v42 = vld [vmem:[#allocation3 + $0xc] sm:$0xff]  ;;  %v433_v60 = vld [vmem:[#allocation2 + $0x64] sm:$0xf] }
  0x29   : > { %v313_v25 = vadd.f32 %v302_v62, %v289_v15  ;;  %v268_v27 = vadd.f32 %v257_v24, %v244_v23  ;;  %v329_v30 = vld [vmem:[#allocation3] sm:$0xff]  ;;  %v330_v33 = vld [vmem:[#allocation3 + $0x8] sm:$0xff]  ;;  %v331_v43 = vld [vmem:[#allocation3 + $0x10] sm:$0xff] }
  0x2a   : > { %v337_v32 = vld [vmem:[#allocation3 + $0x4] sm:$0xff]  ;;  %v314_v35 = vadd.f32 %v303_v13, %v290_v26  ;;  %v315_v41 = vadd.f32 %v304_v22, %v291_v31  ;;  %v346_v47 = vadd.f32 %v338_v42, %v330_v33  ;;  %v339_v48 = vld [vmem:[#allocation3 + $0x14] sm:$0xff] }
  0x2b   : > { %v431_v34 = vld [vmem:[#allocation2 + $0x54] sm:$0xff]  ;;  %324 = vst.msk [vmem:[#allocation3 + $0x38] sm:$0xff] %vm201_vm0, %v313_v25  ;;  %v292_v36 = vadd.f32 %v281_v28, %v268_v27  ;;  %v345_v37 = vadd.f32 %v337_v32, %v329_v30  ;;  %v332_v49 = vld [vmem:[#allocation3 + $0x18] sm:$0xff]  ;;  %v437_v50 = vld [vmem:[#allocation2 + $0x5d] sm:$0xff]  ;;  %v347_v57 = vadd.f32 %v339_v48, %v331_v43 }
  0x2c   : > { %v436_v38 = vld [vmem:[#allocation2 + $0x55] sm:$0xff]  ;;  %325 = vst.msk [vmem:[#allocation3 + $0x40] sm:$0xff] %vm201_vm0, %v314_v35  ;;  %464 = vst.msk [vmem:[#allocation3] sm:$0xff] %vm201_vm0, %v314_v35  ;;  %v442_v54 = vadd.f32 %v437_v50, %v432_v45  ;;  %v447_v55 = vld [vmem:[#allocation2 + $0x5e] sm:$0xff]  ;;  %v355_v63 = vadd.f32 %v346_v47, %v331_v43 }
  0x2d   : > { %v446_v39 = vld [vmem:[#allocation2 + $0x56] sm:$0xff]  ;;  %v441_v44 = vadd.f32 %v436_v38, %v431_v34  ;;  %v316_v46 = vadd.f32 %v305_v29, %v292_v36  ;;  %v354_v51 = vadd.f32 %v345_v37, %v330_v33  ;;  %326 = vst.msk [vmem:[#allocation3 + $0x48] sm:$0xff] %vm201_vm0, %v315_v41  ;;  %465 = vst.msk [vmem:[#allocation3 + $0x8] sm:$0xff] %vm201_vm0, %v315_v41  ;;  %v340_v53 = vld [vmem:[#allocation3 + $0x1c] sm:$0xff] }
  0x2e   : > { %v456_v40 = vld [vmem:[#allocation2 + $0x57] sm:$0xff]  ;;  %v457_v56 = vld [vmem:[#allocation2 + $0x5f] sm:$0xff]  ;;  %v348_v59 = vadd.f32 %v340_v53, %v332_v49  ;;  %v452_v9 = vadd.f32 %v447_v55, %v442_v54  ;;  %v458_v14 = vld [vmem:[#allocation2 + $0x67] sm:$0xf]  ;;  %v356_v16 = vadd.f32 %v347_v57, %v332_v49  ;;  %v364_v19 = vadd.f32 %v355_v63, %v339_v48 }
  0x2f   : > { %v451_v52 = vadd.f32 %v446_v39, %v441_v44  ;;  %328 = vst.msk [vmem:[#allocation3 + $0x50] sm:$0xf] %vm327_vm2, %v316_v46  ;;  %v333_v58 = vld [vmem:[#allocation3 + $0x20] sm:$0xff]  ;;  %v438_v61 = vld [vmem:[#allocation2 + $0x65] sm:$0xf]  ;;  %v363_v62 = vadd.f32 %v354_v51, %v338_v42  ;;  %v334_v21 = vld [vmem:[#allocation3 + $0x28] sm:$0xff] }
  0x30   : > { %v443_v12 = vadd.f32 %v438_v61, %v433_v60  ;;  %v448_v13 = vld [vmem:[#allocation2 + $0x66] sm:$0xf]  ;;  %v341_v15 = vld [vmem:[#allocation3 + $0x24] sm:$0xff]  ;;  %v357_v17 = vadd.f32 %v348_v59, %v333_v58  ;;  %v342_v22 = vld [vmem:[#allocation3 + $0x2c] sm:$0xff]  ;;  %v462_v24 = vadd.f32 %v457_v56, %v452_v9  ;;  %v365_v26 = vadd.f32 %v356_v16, %v340_v53 }
  0x31   : > { %v461_v0 = vadd.f32 %v456_v40, %v451_v52  ;;  %v372_v18 = vadd.f32 %v363_v62, %v331_v43  ;;  %v349_v20 = vadd.f32 %v341_v15, %v333_v58  ;;  %v335_v23 = vld [vmem:[#allocation3 + $0x30] sm:$0xff]  ;;  %v350_v27 = vadd.f32 %v342_v22, %v334_v21 }
  0x32   : > { %v453_v25 = vadd.f32 %v448_v13, %v443_v12  ;;  %v343_v28 = vld [vmem:[#allocation3 + $0x34] sm:$0xff]  ;;  %v373_v31 = vadd.f32 %v364_v19, %v332_v49  ;;  %v366_v32 = vadd.f32 %v357_v17, %v341_v15  ;;  %467 = vst.msk [vmem:[#allocation3 + $0x18] sm:$0xff] %vm201_vm0, %v462_v24  ;;  %v374_v35 = vadd.f32 %v365_v26, %v333_v58 }
  0x33   : > { %466 = vst.msk [vmem:[#allocation3 + $0x10] sm:$0xff] %vm201_vm0, %v461_v0  ;;  %v336_v29 = vld [vmem:[#allocation3 + $0x38] sm:$0xff]  ;;  %v381_v30 = vadd.f32 %v372_v18, %v339_v48  ;;  %v351_v33 = vadd.f32 %v343_v28, %v335_v23  ;;  %v358_v36 = vadd.f32 %v349_v20, %v334_v21  ;;  %v359_v38 = vadd.f32 %v350_v27, %v335_v23  ;;  %v353_v39 = vld [vmem:[#allocation3 + $0x40] sm:$0xff] }
  0x34   : > { %v463_v34 = vadd.f32 %v458_v14, %v453_v25  ;;  %v344_v37 = vld [vmem:[#allocation3 + $0x3c] sm:$0xff]  ;;  %v382_v41 = vadd.f32 %v373_v31, %v340_v53  ;;  %v375_v42 = vadd.f32 %v366_v32, %v334_v21  ;;  %v383_v44 = vadd.f32 %v374_v35, %v341_v15  ;;  %v362_v48 = vld [vmem:[#allocation3 + $0x44] sm:$0xff] }
  0x35   : > { %v389_v40 = vmul.f32 0.041666668, %v381_v30  ;;  %v352_v43 = vadd.f32 %v344_v37, %v336_v29  ;;  %v367_v45 = vadd.f32 %v358_v36, %v342_v22  ;;  %v368_v46 = vadd.f32 %v359_v38, %v343_v28  ;;  %v469_v49 = vld [vmem:[#allocation3] sm:$0xff]  ;;  %v470_v59 = vld [vmem:[#allocation3 + $0x8] sm:$0xff] }
  0x36   : > { %468 = vst.msk [vmem:[#allocation3 + $0x20] sm:$0xf] %vm327_vm2, %v463_v34  ;;  %v360_v47 = vadd.f32 %v351_v33, %v336_v29  ;;  %v471_v50 = vld [vmem:[#allocation3 + $0x4] sm:$0xff]  ;;  %v390_v51 = vmul.f32 0.041666668, %v382_v41  ;;  %v384_v52 = vadd.f32 %v375_v42, %v342_v22  ;;  %v380_v21 = vld [vmem:[#allocation3 + $0x4c] sm:$0xff] }
  0x37   : > { %397 = vst.msk [vmem:[%s794_s19] sm:$0xff] %vm201_vm0, %v389_v40  ;;  %v361_v53 = vadd.f32 %v353_v39, %v352_v43  ;;  %v413_v54 = vsub.f32 %v731_v1, %v389_v40  ;;  %v391_v55 = vmul.f32 0.041666668, %v383_v44  ;;  %v376_v56 = vadd.f32 %v367_v45, %v335_v23  ;;  %v371_v13 = vld [vmem:[#allocation3 + $0x48] sm:$0xff] }
  0x38   : > { %v377_v57 = vadd.f32 %v368_v46, %v336_v29  ;;  %v369_v58 = vadd.f32 %v360_v47, %v344_v37  ;;  %398 = vst.msk [vmem:[%s794_s19 + $0x8] sm:$0xff] %vm201_vm0, %v390_v51  ;;  %v392_v60 = vmul.f32 0.041666668, %v384_v52  ;;  %v414_v62 = vsub.f32 %v733_v2, %v390_v51 }
  0x39   : > { %v370_v61 = vadd.f32 %v362_v48, %v361_v53  ;;  %421 = vst.msk [vmem:[%s801_s22] sm:$0xff] %vm201_vm0, %v413_v54  ;;  %v473_v0 = vadd.f32 %v471_v50, %v469_v49  ;;  %399 = vst.msk [vmem:[%s794_s19 + $0x10] sm:$0xff] %vm201_vm0, %v391_v55  ;;  %v385_v1 = vadd.f32 %v376_v56, %v343_v28  ;;  %v481_v32 = vld [vmem:[#allocation3 + $0x18] sm:$0xff] }
  0x3a   : > { %v472_v63 = vld [vmem:[#allocation3 + $0xc] sm:$0xff]  ;;  %v386_v9 = vadd.f32 %v377_v57, %v344_v37  ;;  %v378_v12 = vadd.f32 %v369_v58, %v353_v39  ;;  %v415_v14 = vsub.f32 %v741_v3, %v391_v55  ;;  %400 = vst.msk [vmem:[%s794_s19 + $0x18] sm:$0xff] %vm201_vm0, %v392_v60  ;;  %422 = vst.msk [vmem:[%s801_s22 + $0x8] sm:$0xff] %vm201_vm0, %v414_v62  ;;  %v478_v27 = vld [vmem:[#allocation3 + $0x14] sm:$0xff] }
  0x3b   : > { %v379_v15 = vadd.f32 %v371_v13, %v370_v61  ;;  %v416_v2 = vsub.f32 %v743_v4, %v392_v60  ;;  %v474_v16 = vadd.f32 %v472_v63, %v470_v59  ;;  %v476_v17 = vadd.f32 %v473_v0, %v470_v59  ;;  %v475_v3 = vld [vmem:[#allocation3 + $0x10] sm:$0xff] }
  0x3c   : > { %v393_v18 = vmul.f32 0.041666668, %v385_v1  ;;  %v394_v19 = vmul.f32 0.041666668, %v386_v9  ;;  %v387_v20 = vadd.f32 %v378_v12, %v362_v48  ;;  %423 = vst.msk [vmem:[%s801_s22 + $0x10] sm:$0xff] %vm201_vm0, %v415_v14 }
  0x3d   : > { %v388_v22 = vadd.f32 %v380_v21, %v379_v15  ;;  %424 = vst.msk [vmem:[%s801_s22 + $0x18] sm:$0xff] %vm201_vm0, %v416_v2  ;;  %v477_v23 = vadd.f32 %v475_v3, %v474_v16  ;;  %v479_v24 = vadd.f32 %v476_v17, %v472_v63  ;;  %v484_v34 = vld [vmem:[#allocation3 + $0x1c] sm:$0xff] }
  0x3e   : > { %401 = vst.msk [vmem:[%s794_s19 + $0x20] sm:$0xff] %vm201_vm0, %v393_v18  ;;  %402 = vst.msk [vmem:[%s794_s19 + $0x28] sm:$0xff] %vm201_vm0, %v394_v19  ;;  %v395_v4 = vmul.f32 0.041666668, %v387_v20  ;;  %v417_v25 = vsub.f32 %v745_v5, %v393_v18  ;;  %v418_v26 = vsub.f32 %v753_v6, %v394_v19 }
  0x3f   : > { %v396_v28 = vmul.f32 0.041666668, %v388_v22  ;;  %v480_v29 = vadd.f32 %v478_v27, %v477_v23  ;;  %v482_v30 = vadd.f32 %v479_v24, %v475_v3 }
  0x40   : > { %403 = vst.msk [vmem:[%s794_s19 + $0x30] sm:$0xff] %vm201_vm0, %v395_v4  ;;  %425 = vst.msk [vmem:[%s801_s22 + $0x20] sm:$0xff] %vm201_vm0, %v417_v25  ;;  %v419_v31 = vsub.f32 %v755_v7, %v395_v4 }
  0x41   : > { %426 = vst.msk [vmem:[%s801_s22 + $0x28] sm:$0xff] %vm201_vm0, %v418_v26  ;;  %404 = vst.msk [vmem:[%s794_s19 + $0x38] sm:$0xff] %vm201_vm0, %v396_v28  ;;  %v420_v5 = vsub.f32 %v757_v8, %v396_v28  ;;  %v485_v6 = vadd.f32 %v482_v30, %v478_v27  ;;  %v483_v33 = vadd.f32 %v481_v32, %v480_v29 }
  0x42   : > { %427 = vst.msk [vmem:[%s801_s22 + $0x30] sm:$0xff] %vm201_vm0, %v419_v31 }
  0x43   : > { %428 = vst.msk [vmem:[%s801_s22 + $0x38] sm:$0xff] %vm201_vm0, %v420_v5  ;;  %v487_v35 = vmul.f32 0.041666668, %v485_v6  ;;  %v486_v36 = vadd.f32 %v484_v34, %v483_v33 }
  0x45   : > { %489 = vst.msk [vmem:[%s794_s19 + $0x40] sm:$0xff] %vm201_vm0, %v487_v35  ;;  %v488_v37 = vmul.f32 0.041666668, %v486_v36  ;;  %v493_v7 = vsub.f32 %v765_v10, %v487_v35 }
  0x47   : > { %490 = vst.msk [vmem:[%s794_s19 + $0x48] sm:$0xff] %vm201_vm0, %v488_v37  ;;  %495 = vst.msk [vmem:[%s801_s22 + $0x40] sm:$0xff] %vm201_vm0, %v493_v7  ;;  %v494_v8 = vsub.f32 %v767_v11, %v488_v37 }
  0x49   : > { %496 = vst.msk [vmem:[%s801_s22 + $0x48] sm:$0xff] %vm201_vm0, %v494_v8 }
  0x4a PF: > { %s13_s11 = sadd.s32 1, %s690_s11   ;;  %s865_s9 = smov %s686_s10 }
  0x4b   : > { %p10_p5 = scmp.ge.s32.totalorder %s13_s11, 4   ;;  %s866_s10 = smov %s868_s12 }
  0x4d   :  { %12 = sbr.rel (!%p10_p5) target bundleno = 2 (0x2), region = 70 }

</bundles_post_ra>
